<compile_context>
chip_gen: v7x
topology: tpu7x:2x2x1
jax: 0.10.0
libtpu: 0.0.40
codegen_flags: <defaults>
</compile_context>

<pallas_src>
import functools
import math

import jax
import jax.numpy as jnp
from jax.experimental import pallas as pl
from jax.experimental.pallas import tpu as pltpu

IN_F, HID_F, OUT_F = 3, 2, 3
SUBLANES = 8
LANES = 128
BATCH_ALIGN = SUBLANES * LANES          # 1024: batch padding granularity
MIN_TILE_N = 8192                       # >= ~100 KiB per grid step each way
MAX_TILE_N = 65536                      # ~0.75 MiB per grid step each way
CHUNK_COLS_MAX = 512                    # in-register chunk width (lanes)


def _round_up(v, m):
    return -(-v // m) * m


def _ae_kernel(p_ref, x_ref, o_ref, *, n_chunks, chunk_cols):
    # p_ref: SMEM (17,) f32 = [w1 (2x3 row-major), b1 (2), w2 (3x2 row-major), b2 (3)]
    # x_ref: VMEM (3, 8, tile_cols) f32 -- feature major, batch on (sublane, lane)
    # o_ref: VMEM (3, 8, tile_cols) f32

    # Hoist the 17 scalar SMEM reads out of the chunk loop.
    w100, w101, w102 = p_ref[0], p_ref[1], p_ref[2]
    w110, w111, w112 = p_ref[3], p_ref[4], p_ref[5]
    b10, b11 = p_ref[6], p_ref[7]
    w200, w201 = p_ref[8], p_ref[9]
    w210, w211 = p_ref[10], p_ref[11]
    w220, w221 = p_ref[12], p_ref[13]
    b20, b21, b22 = p_ref[14], p_ref[15], p_ref[16]

    # Static chunk loop: each chunk is a full-8-sublane slab of <= 512 lanes so
    # x / h / out stay in vregs and every store is a full, unmasked vst.
    for c in range(n_chunks):
        lo, hi = c * chunk_cols, (c + 1) * chunk_cols
        x0 = x_ref[0, :, lo:hi]
        x1 = x_ref[1, :, lo:hi]
        x2 = x_ref[2, :, lo:hi]

        # encoder: h_j = relu(sum_i w1[j,i] * x_i + b1[j])   (VPU broadcast FMAs)
        h0 = jnp.maximum(w100 * x0 + w101 * x1 + w102 * x2 + b10, 0.0)
        h1 = jnp.maximum(w110 * x0 + w111 * x1 + w112 * x2 + b11, 0.0)

        # decoder: y_k = relu(sum_j w2[k,j] * h_j + b2[k])
        o_ref[0, :, lo:hi] = jnp.maximum(w200 * h0 + w201 * h1 + b20, 0.0)
        o_ref[1, :, lo:hi] = jnp.maximum(w210 * h0 + w211 * h1 + b21, 0.0)
        o_ref[2, :, lo:hi] = jnp.maximum(w220 * h0 + w221 * h1 + b22, 0.0)


def autoencoder_forward(x, w1, b1, w2, b2, tile_n=None):
    """AutoEncoder forward.  x: (N, 3) f32 -> (N, 3) f32.

    w1: (2, 3), b1: (2,), w2: (3, 2), b2: (3,)  (PyTorch nn.Linear layout).
    """
    n = x.shape[0]

    # Pad the batch to a multiple of 1024 so each feature row reshapes to
    # (8 sublanes, cols) with cols a lane multiple.
    n_align = _round_up(max(n, 1), BATCH_ALIGN)
    if tile_n is None:
        # Aim for >= 4 grid steps on large batches (2 per v7x TC) with >= ~1 MiB
        # of payload per step, capped to keep VMEM tiny.
        tile_n = min(MAX_TILE_N, max(MIN_TILE_N, _round_up(n_align // 4, BATCH_ALIGN)))
    tile_n = _round_up(min(tile_n, n_align), BATCH_ALIGN)
    n_pad = _round_up(n_align, tile_n)
    grid = (n_pad // tile_n,)

    tile_cols = tile_n // SUBLANES                        # multiple of 128
    cols = n_pad // SUBLANES
    chunk_cols = math.gcd(tile_cols, CHUNK_COLS_MAX)      # 128 / 256 / 512
    n_chunks = tile_cols // chunk_cols

    # 17 real scalars, packed once for SMEM.
    params = jnp.concatenate(
        [w1.reshape(-1), b1.reshape(-1), w2.reshape(-1), b2.reshape(-1)]
    ).astype(jnp.float32)                                 # (17,)

    # Feature-major activations, batch spread over (sublane, lane): (3, 8, cols).
    # Under jit this pad/transpose fuses with neighbouring ops.
    x_t = (
        jnp.zeros((IN_F, n_pad), jnp.float32)
        .at[:, :n].set(x.astype(jnp.float32).T)
        .reshape(IN_F, SUBLANES, cols)
    )

    out_t = pl.pallas_call(
        functools.partial(_ae_kernel, n_chunks=n_chunks, chunk_cols=chunk_cols),
        out_shape=jax.ShapeDtypeStruct((OUT_F, SUBLANES, cols), jnp.float32),
        grid_spec=pltpu.PrefetchScalarGridSpec(
            num_scalar_prefetch=0,
            grid=grid,
            in_specs=[
                pl.BlockSpec(memory_space=pltpu.MemorySpace.SMEM),          # params (17,)
                pl.BlockSpec((IN_F, SUBLANES, tile_cols), lambda i: (0, 0, i)),
            ],
            out_specs=pl.BlockSpec((OUT_F, SUBLANES, tile_cols), lambda i: (0, 0, i)),
        ),
        compiler_params=pltpu.CompilerParams(
            dimension_semantics=("parallel",)),
    )(params, x_t)

    # Undo the layout plumbing (fuses under jit); padded samples are dropped here.
    return out_t.reshape(OUT_F, n_pad)[:, :n].T


def _init_params(key):
    # Deterministic synthetic init mimicking nn.Linear uniform(-1/sqrt(fan_in), ...)
    k1, k2, k3, k4 = jax.random.split(key, 4)
    lim1 = 1.0 / jnp.sqrt(float(IN_F))
    lim2 = 1.0 / jnp.sqrt(float(HID_F))
    w1 = jax.random.uniform(k1, (HID_F, IN_F), jnp.float32, -lim1, lim1)
    b1 = jax.random.uniform(k2, (HID_F,), jnp.float32, -lim1, lim1)
    w2 = jax.random.uniform(k3, (OUT_F, HID_F), jnp.float32, -lim2, lim2)
    b2 = jax.random.uniform(k4, (OUT_F,), jnp.float32, -lim2, lim2)
    return w1, b1, w2, b2


def _reference(x, w1, b1, w2, b2):
    h = jnp.maximum(x @ w1.T + b1, 0.0)
    return jnp.maximum(h @ w2.T + b2, 0.0)


if __name__ == "__main__":
    key = jax.random.PRNGKey(0)
    kx, kx2, kp = jax.random.split(key, 3)
    w1, b1, w2, b2 = _init_params(kp)

    fwd = jax.jit(autoencoder_forward, static_argnames=("tile_n",))

    # Small case (single tile).
    x_small = jax.random.normal(kx, (8, IN_F), jnp.float32)
    out_small = jax.block_until_ready(fwd(x_small, w1, b1, w2, b2))
    assert out_small.shape == (8, OUT_F)
    assert jnp.allclose(out_small, _reference(x_small, w1, b1, w2, b2),
                        atol=1e-5, rtol=1e-5)

    # Odd batch with a multi-step grid (exercises tiling, padding and the
    # "parallel" megacore path).
    x_big = jax.random.normal(kx2, (3000, IN_F), jnp.float32)
    out_big = jax.block_until_ready(fwd(x_big, w1, b1, w2, b2, tile_n=1024))
    assert out_big.shape == (3000, OUT_F)
    assert jnp.allclose(out_big, _reference(x_big, w1, b1, w2, b2),
                        atol=1e-5, rtol=1e-5)

    print("KERNEL_OK")
</pallas_src>

<mosaic_0001>
module attributes {stable_mosaic.version = 11 : i64} {
  func.func @_ae_kernel(%arg0: i32, %arg1: memref<17xf32, #tpu.memory_space<smem>>, %arg2: memref<3x8x128xf32, #tpu.memory_space<vmem>>, %arg3: memref<3x8x128xf32, #tpu.memory_space<vmem>>) attributes {dimension_semantics = [#tpu.dimension_semantics<parallel>], iteration_bounds = array<i64: 1>, scalar_prefetch = 0 : i64, scratch_operands = 0 : i64, tpu.core_type = #tpu.core_type<tc>, window_params = [{transform_indices = @transform_0, window_bounds = array<i64: 17>}, {transform_indices = @transform_1, window_bounds = array<i64: 3, 8, 128>}, {transform_indices = @transform_2, window_bounds = array<i64: 3, 8, 128>}]} {
    %c0 = arith.constant 0 : index
    %0 = memref.load %arg1[%c0] : memref<17xf32, #tpu.memory_space<smem>>
    %c1 = arith.constant 1 : index
    %1 = memref.load %arg1[%c1] : memref<17xf32, #tpu.memory_space<smem>>
    %c2 = arith.constant 2 : index
    %2 = memref.load %arg1[%c2] : memref<17xf32, #tpu.memory_space<smem>>
    %c3 = arith.constant 3 : index
    %3 = memref.load %arg1[%c3] : memref<17xf32, #tpu.memory_space<smem>>
    %c4 = arith.constant 4 : index
    %4 = memref.load %arg1[%c4] : memref<17xf32, #tpu.memory_space<smem>>
    %c5 = arith.constant 5 : index
    %5 = memref.load %arg1[%c5] : memref<17xf32, #tpu.memory_space<smem>>
    %c6 = arith.constant 6 : index
    %6 = memref.load %arg1[%c6] : memref<17xf32, #tpu.memory_space<smem>>
    %c7 = arith.constant 7 : index
    %7 = memref.load %arg1[%c7] : memref<17xf32, #tpu.memory_space<smem>>
    %c8 = arith.constant 8 : index
    %8 = memref.load %arg1[%c8] : memref<17xf32, #tpu.memory_space<smem>>
    %c9 = arith.constant 9 : index
    %9 = memref.load %arg1[%c9] : memref<17xf32, #tpu.memory_space<smem>>
    %c10 = arith.constant 10 : index
    %10 = memref.load %arg1[%c10] : memref<17xf32, #tpu.memory_space<smem>>
    %c11 = arith.constant 11 : index
    %11 = memref.load %arg1[%c11] : memref<17xf32, #tpu.memory_space<smem>>
    %c12 = arith.constant 12 : index
    %12 = memref.load %arg1[%c12] : memref<17xf32, #tpu.memory_space<smem>>
    %c13 = arith.constant 13 : index
    %13 = memref.load %arg1[%c13] : memref<17xf32, #tpu.memory_space<smem>>
    %c14 = arith.constant 14 : index
    %14 = memref.load %arg1[%c14] : memref<17xf32, #tpu.memory_space<smem>>
    %c15 = arith.constant 15 : index
    %15 = memref.load %arg1[%c15] : memref<17xf32, #tpu.memory_space<smem>>
    %c16 = arith.constant 16 : index
    %16 = memref.load %arg1[%c16] : memref<17xf32, #tpu.memory_space<smem>>
    %c0_0 = arith.constant 0 : index
    %c0_1 = arith.constant 0 : index
    %c0_2 = arith.constant 0 : index
    %17 = vector.load %arg2[%c0_0, %c0_1, %c0_2] : memref<3x8x128xf32, #tpu.memory_space<vmem>>, vector<1x8x128xf32>
    %18 = vector.shape_cast %17 : vector<1x8x128xf32> to vector<8x128xf32>
    %c1_3 = arith.constant 1 : index
    %c0_4 = arith.constant 0 : index
    %c0_5 = arith.constant 0 : index
    %19 = vector.load %arg2[%c1_3, %c0_4, %c0_5] : memref<3x8x128xf32, #tpu.memory_space<vmem>>, vector<1x8x128xf32>
    %20 = vector.shape_cast %19 : vector<1x8x128xf32> to vector<8x128xf32>
    %c2_6 = arith.constant 2 : index
    %c0_7 = arith.constant 0 : index
    %c0_8 = arith.constant 0 : index
    %21 = vector.load %arg2[%c2_6, %c0_7, %c0_8] : memref<3x8x128xf32, #tpu.memory_space<vmem>>, vector<1x8x128xf32>
    %22 = vector.shape_cast %21 : vector<1x8x128xf32> to vector<8x128xf32>
    %23 = vector.broadcast %0 : f32 to vector<8x128xf32>
    %24 = arith.mulf %23, %18 : vector<8x128xf32>
    %25 = vector.broadcast %1 : f32 to vector<8x128xf32>
    %26 = arith.mulf %25, %20 : vector<8x128xf32>
    %27 = arith.addf %24, %26 : vector<8x128xf32>
    %28 = vector.broadcast %2 : f32 to vector<8x128xf32>
    %29 = arith.mulf %28, %22 : vector<8x128xf32>
    %30 = arith.addf %27, %29 : vector<8x128xf32>
    %31 = vector.broadcast %6 : f32 to vector<8x128xf32>
    %32 = arith.addf %30, %31 : vector<8x128xf32>
    %cst = arith.constant 0.000000e+00 : f32
    %33 = vector.broadcast %cst : f32 to vector<8x128xf32>
    %34 = arith.maximumf %32, %33 : vector<8x128xf32>
    %35 = vector.broadcast %3 : f32 to vector<8x128xf32>
    %36 = arith.mulf %35, %18 : vector<8x128xf32>
    %37 = vector.broadcast %4 : f32 to vector<8x128xf32>
    %38 = arith.mulf %37, %20 : vector<8x128xf32>
    %39 = arith.addf %36, %38 : vector<8x128xf32>
    %40 = vector.broadcast %5 : f32 to vector<8x128xf32>
    %41 = arith.mulf %40, %22 : vector<8x128xf32>
    %42 = arith.addf %39, %41 : vector<8x128xf32>
    %43 = vector.broadcast %7 : f32 to vector<8x128xf32>
    %44 = arith.addf %42, %43 : vector<8x128xf32>
    %cst_9 = arith.constant 0.000000e+00 : f32
    %45 = vector.broadcast %cst_9 : f32 to vector<8x128xf32>
    %46 = arith.maximumf %44, %45 : vector<8x128xf32>
    %47 = vector.broadcast %8 : f32 to vector<8x128xf32>
    %48 = arith.mulf %47, %34 : vector<8x128xf32>
    %49 = vector.broadcast %9 : f32 to vector<8x128xf32>
    %50 = arith.mulf %49, %46 : vector<8x128xf32>
    %51 = arith.addf %48, %50 : vector<8x128xf32>
    %52 = vector.broadcast %14 : f32 to vector<8x128xf32>
    %53 = arith.addf %51, %52 : vector<8x128xf32>
    %cst_10 = arith.constant 0.000000e+00 : f32
    %54 = vector.broadcast %cst_10 : f32 to vector<8x128xf32>
    %55 = arith.maximumf %53, %54 : vector<8x128xf32>
    %c0_11 = arith.constant 0 : index
    %c0_12 = arith.constant 0 : index
    %c0_13 = arith.constant 0 : index
    %56 = vector.load %arg3[%c0_11, %c0_12, %c0_13] : memref<3x8x128xf32, #tpu.memory_space<vmem>>, vector<1x8x128xf32>
    %57 = vector.shape_cast %56 : vector<1x8x128xf32> to vector<8x128xf32>
    %58 = vector.shape_cast %55 : vector<8x128xf32> to vector<1x8x128xf32>
    tpu.vector_store %arg3[%c0_11, %c0_12, %c0_13], %58 {strides = array<i32>} : memref<3x8x128xf32, #tpu.memory_space<vmem>>, vector<1x8x128xf32>,
    %59 = vector.broadcast %10 : f32 to vector<8x128xf32>
    %60 = arith.mulf %59, %34 : vector<8x128xf32>
    %61 = vector.broadcast %11 : f32 to vector<8x128xf32>
    %62 = arith.mulf %61, %46 : vector<8x128xf32>
    %63 = arith.addf %60, %62 : vector<8x128xf32>
    %64 = vector.broadcast %15 : f32 to vector<8x128xf32>
    %65 = arith.addf %63, %64 : vector<8x128xf32>
    %cst_14 = arith.constant 0.000000e+00 : f32
    %66 = vector.broadcast %cst_14 : f32 to vector<8x128xf32>
    %67 = arith.maximumf %65, %66 : vector<8x128xf32>
    %c1_15 = arith.constant 1 : index
    %c0_16 = arith.constant 0 : index
    %c0_17 = arith.constant 0 : index
    %68 = vector.load %arg3[%c1_15, %c0_16, %c0_17] : memref<3x8x128xf32, #tpu.memory_space<vmem>>, vector<1x8x128xf32>
    %69 = vector.shape_cast %68 : vector<1x8x128xf32> to vector<8x128xf32>
    %70 = vector.shape_cast %67 : vector<8x128xf32> to vector<1x8x128xf32>
    tpu.vector_store %arg3[%c1_15, %c0_16, %c0_17], %70 {strides = array<i32>} : memref<3x8x128xf32, #tpu.memory_space<vmem>>, vector<1x8x128xf32>,
    %71 = vector.broadcast %12 : f32 to vector<8x128xf32>
    %72 = arith.mulf %71, %34 : vector<8x128xf32>
    %73 = vector.broadcast %13 : f32 to vector<8x128xf32>
    %74 = arith.mulf %73, %46 : vector<8x128xf32>
    %75 = arith.addf %72, %74 : vector<8x128xf32>
    %76 = vector.broadcast %16 : f32 to vector<8x128xf32>
    %77 = arith.addf %75, %76 : vector<8x128xf32>
    %cst_18 = arith.constant 0.000000e+00 : f32
    %78 = vector.broadcast %cst_18 : f32 to vector<8x128xf32>
    %79 = arith.maximumf %77, %78 : vector<8x128xf32>
    %c2_19 = arith.constant 2 : index
    %c0_20 = arith.constant 0 : index
    %c0_21 = arith.constant 0 : index
    %80 = vector.load %arg3[%c2_19, %c0_20, %c0_21] : memref<3x8x128xf32, #tpu.memory_space<vmem>>, vector<1x8x128xf32>
    %81 = vector.shape_cast %80 : vector<1x8x128xf32> to vector<8x128xf32>
    %82 = vector.shape_cast %79 : vector<8x128xf32> to vector<1x8x128xf32>
    tpu.vector_store %arg3[%c2_19, %c0_20, %c0_21], %82 {strides = array<i32>} : memref<3x8x128xf32, #tpu.memory_space<vmem>>, vector<1x8x128xf32>,
    return
  }
  func.func @transform_0(%arg0: i32) -> i32 {
    %c0_i32 = arith.constant 0 : i32
    %c0_i32_0 = arith.constant 0 : i32
    return %c0_i32 : i32
  }
  func.func @transform_1(%arg0: i32) -> (i32, i32, i32) {
    %c0_i32 = arith.constant 0 : i32
    %c0_i32_0 = arith.constant 0 : i32
    %c0_i32_1 = arith.constant 0 : i32
    return %c0_i32, %c0_i32_0, %arg0 : i32, i32, i32
  }
  func.func @transform_2(%arg0: i32) -> (i32, i32, i32) {
    %c0_i32 = arith.constant 0 : i32
    %c0_i32_0 = arith.constant 0 : i32
    %c0_i32_1 = arith.constant 0 : i32
    return %c0_i32, %c0_i32_0, %arg0 : i32, i32, i32
  }
}

</mosaic_0001>

<bundles_post_ra>
// kernel: autoencoder_forward.1
= control target key start
LH: loop header
LB: loop body
LE: loop exit
PB: predicated region body
PF: predicated region fallthrough
CT: control target
= control target key end

     0   :  { %7 = vsyncpa [#allocation3], 0  ;;  %s189_s0 = inlined_call_operand.vmem [shape: f32[17], index: 0, kind: input, shape index: {}]   ;;  %s190_s1 = inlined_call_operand.vmem [shape: f32[3,8,128], index: 1, kind: input, shape index: {}]   ;;  %s191_s2 = inlined_call_operand.vmem [shape: f32[3,8,128], index: 2, kind: output, shape index: {}]  }
   0x1   :  { %s14_s11 = sshll.u32 %s189_s0, 4  ;;  %s15_s11 = int_to_ptr.vmem [resolvable:$true] %s14_s11 }
   0x2   :  { %s123_s12 = scalar_lea.vmem %s15_s11, 16  ;;  %p128_p1 = scmp.lt.s32.totalorder %s15_s11, %s15_s11 }
   0x3   :  { %p124_p0 = scmp.ne.s32.totalorder %s15_s11, %s123_s12  ;;  %p129_p2 = scmp.lt.s32.totalorder %s123_s12, %s123_s12 }
   0x5   :  { %p130_p3 = por %p129_p2, %p128_p1 }
   0x7   :  { %p131_p4 = pnand %p130_p3, %p124_p0 }
   0x9   :  { %134 = shalt.err (!%p131_p4)
}
   0xa   :  { %s137_s13 = smov [#allocation2]  }
   0xb   :  { %17 = dma.vmem_to_smem %s15_s11, 16, %s137_s13, [#allocation3]  }
   0xc   :  { %135 = dma.done.wait [#allocation3], 16  }
   0xd   :  { %136 = vsyncadd [#allocation3], 4294967280 }
   0xe   :  { %23 = sfence }
   0xf   :  { %s24_s14 = sld [smem:[#allocation2]]  ;;  %s102_s15 = sld [smem:[#allocation2 + $0x1]]  ;;  %v41_v0 = vld [vmem:[%s190_s1] sm:$0xff]  ;;  %v118_v1 = vld [vmem:[%s190_s1 + $0x8] sm:$0xff]  ;;  %v119_v2 = vld [vmem:[%s190_s1 + $0x10] sm:$0xff] }
  0x10   :  { %s103_s16 = sld [smem:[#allocation2 + $0x2]]  ;;  %s104_s17 = sld [smem:[#allocation2 + $0x3]] }
  0x11   :  { %s105_s18 = sld [smem:[#allocation2 + $0x4]]  ;;  %s106_s19 = sld [smem:[#allocation2 + $0x5]] }
  0x12   :  { %s156_s0 = sld [smem:[#allocation2 + $0x6]]  ;;  %s158_s20 = sld [smem:[#allocation2 + $0x7]] }
  0x13   :  { %s169_s27 = sld [smem:[#allocation2 + $0x8]]  ;;  %s171_s28 = sld [smem:[#allocation2 + $0xa]] }
  0x14   :  { %s173_s29 = sld [smem:[#allocation2 + $0x9]]  ;;  %s113_s30 = sld [smem:[#allocation2 + $0xc]] }
  0x15   :  { %v46_v3 = vstv %s24_s14  ;;  %v48_v4 = vstv %s102_s15  ;;  %s112_s1 = sld [smem:[#allocation2 + $0xb]]  ;;  %s114_s3 = sld [smem:[#allocation2 + $0xd]] }
  0x16   :  { %v47_v5 = vmul.f32 %v46_v3, %v41_v0  ;;  %v49_v6 = vmul.f32 %v118_v1, %v48_v4  ;;  %v51_v7 = vstv %s103_s16  ;;  %v57_v8 = vstv %s104_s17  ;;  %s115_s4 = sld [smem:[#allocation2 + $0xe]]  ;;  %s116_s5 = sld [smem:[#allocation2 + $0xf]] }
  0x17   :  { %v52_v9 = vmul.f32 %v119_v2, %v51_v7  ;;  %v58_v10 = vmul.f32 %v57_v8, %v41_v0  ;;  %v59_v11 = vstv %s105_s18  ;;  %v62_v12 = vstv %s106_s19  ;;  %s117_s6 = sld [smem:[#allocation2 + $0x10]] }
  0x18   :  { %v50_v13 = vadd.f32 %v49_v6, %v47_v5  ;;  %v60_v14 = vmul.f32 %v118_v1, %v59_v11  ;;  %v63_v15 = vmul.f32 %v119_v2, %v62_v12  ;;  %v54_v16 = vstv %s156_s0 }
  0x19   :  { %v65_v19 = vstv %s158_s20  ;;  %v68_v22 = vstv %s169_s27  ;;  %v77_v23 = vstv %s171_s28 }
  0x1a   :  { %v53_v17 = vadd.f32 %v52_v9, %v50_v13  ;;  %v61_v18 = vadd.f32 %v60_v14, %v58_v10  ;;  %v87_v24 = vstv %s113_s30  ;;  %v70_v27 = vstv %s173_s29 }
  0x1b   :  { %v79_v28 = vstv %s112_s1  ;;  %v89_v29 = vstv %s114_s3 }
  0x1c   :  { %v55_v20 = vadd.f32 %v54_v16, %v53_v17  ;;  %v64_v21 = vadd.f32 %v63_v15, %v61_v18  ;;  %v73_v37 = vstv %s115_s4  ;;  %v82_v38 = vstv %s116_s5 }
  0x1d   :  { %v92_v39 = vstv %s117_s6 }
  0x1e   :  { %v56_v25 = vmax.f32 %v55_v20, 0.0  ;;  %v66_v26 = vadd.f32 %v65_v19, %v64_v21 }
  0x20   :  { %v67_v30 = vmax.f32 %v66_v26, 0.0  ;;  %v69_v31 = vmul.f32 %v68_v22, %v56_v25  ;;  %v78_v32 = vmul.f32 %v77_v23, %v56_v25  ;;  %v88_v33 = vmul.f32 %v87_v24, %v56_v25 }
  0x22   :  { %v71_v34 = vmul.f32 %v70_v27, %v67_v30  ;;  %v80_v35 = vmul.f32 %v79_v28, %v67_v30  ;;  %v90_v36 = vmul.f32 %v89_v29, %v67_v30 }
  0x24   :  { %v72_v40 = vadd.f32 %v71_v34, %v69_v31  ;;  %v81_v41 = vadd.f32 %v80_v35, %v78_v32  ;;  %v91_v42 = vadd.f32 %v90_v36, %v88_v33 }
  0x26   :  { %v74_v43 = vadd.f32 %v73_v37, %v72_v40  ;;  %v83_v44 = vadd.f32 %v82_v38, %v81_v41  ;;  %v93_v45 = vadd.f32 %v92_v39, %v91_v42 }
  0x28   :  { %v75_v46 = vmax.f32 %v74_v43, 0.0  ;;  %v84_v47 = vmax.f32 %v83_v44, 0.0  ;;  %v94_v48 = vmax.f32 %v93_v45, 0.0 }
  0x2a   :  { %76 = vst [vmem:[%s191_s2] sm:$0xff] %v75_v46  ;;  %120 = vst [vmem:[%s191_s2 + $0x8] sm:$0xff] %v84_v47 }
  0x2b   :  { %121 = vst [vmem:[%s191_s2 + $0x10] sm:$0xff] %v94_v48 }
  0x2c   :  { %101 = vsyncpa [#allocation3], 1 }

</bundles_post_ra>
